<compile_context>
chip_gen: v6e
topology: v6e:2x2x1
jax: 0.10.0
libtpu: 0.0.40
codegen_flags: <defaults>
</compile_context>

<pallas_src>
import jax
import jax.numpy as jnp
from jax import lax
from jax.experimental import pallas as pl
from jax.experimental.pallas import tpu as pltpu


def _round_up(x, m):
    return (x + m - 1) // m * m


def _choose_tiles(B, K, N):
    """Static tile / padding selection.  tn/tk/N_pad/K_pad depend on (K, N) only."""
    # --- N: single lane-dense tile whenever possible ---
    N_pad = _round_up(N, 128)
    if N_pad <= 1024:
        tn = N_pad
    else:
        tn = 512
        N_pad = _round_up(N_pad, tn)

    # --- K: one full-extent tile for small K; otherwise the largest tk <= 2048
    #        that divides K_pad exactly (no wasted zero K columns) ---
    if K <= 2048:
        tk, K_pad = K, K
    else:
        K_pad = _round_up(K, 128)
        m = K_pad // 128
        tk = 128
        for d in range(min(m, 16), 0, -1):
            if m % d == 0:
                tk = d * 128
                break

    # --- B: full-extent tile (no row padding) for B <= 512, else ~512-row
    #        tiles rounded to a multiple of 16 (bf16 sublane packing) ---
    if B <= 512:
        tb, B_pad = B, B
    else:
        nt = -(-B // 512)
        tb = _round_up(-(-B // nt), 16)
        B_pad = nt * tb

    # v7x megacore: if the grid would be (1, 1, k), split the batch axis so the
    # second TensorCore gets work -- but only when x traffic >= weight traffic
    # (splitting the batch doubles the weight stream).
    if B_pad // tb == 1 and N_pad // tn == 1 and tb % 32 == 0 and 2 * B_pad >= N_pad:
        tb //= 2

    return tb, B_pad, tn, N_pad, tk, K_pad


def _linear_kernel(x_ref, w_ref, b_ref, o_ref):
    # x_ref : (tb, tk) f32   flattened-image tile
    # w_ref : (tk, tn) bf16  weight tile, pre-transposed to (K, N) at load time
    # b_ref : (1,  tn) f32   bias tile
    # o_ref : (tb, tn) f32   logits tile, resident across the K grid axis
    k = pl.program_id(2)

    @pl.when(k == 0)
    def _():
        # Bias-initialize the resident f32 output tile (bias added exactly once).
        o_ref[...] = jnp.broadcast_to(b_ref[...], o_ref.shape)

    # Cast the x tile to bf16 on the VPU right before the MXU push; the weight
    # is already bf16 and (K, N), so this is a plain ((1,),(0,)) contraction
    # with f32 accumulation -- no per-tile transpose, no scratch accumulator.
    o_ref[...] += lax.dot_general(
        x_ref[...].astype(jnp.bfloat16),
        w_ref[...],
        dimension_numbers=(((1,), (0,)), ((), ())),
        preferred_element_type=jnp.float32,
    )


class LinearClassifierPallas:
    """Pallas-TPU forward pass for the PyTorch `LinearClassifier` module.

    Weight/bias preparation (bf16 cast, (K, N) transpose, lane padding) runs
    once at construction time, not per forward call.
    """

    def __init__(self, weight, bias):
        weight = jnp.asarray(weight, jnp.float32)   # (N, K) PyTorch nn.Linear layout
        bias = jnp.asarray(bias, jnp.float32)       # (N,)
        self.num_classes, self.in_features = weight.shape
        N, K = weight.shape

        _, _, tn, N_pad, tk, K_pad = _choose_tiles(1, K, N)

        w_t = weight.T.astype(jnp.bfloat16)                       # (K, N)
        if (K_pad, N_pad) != (K, N):
            w_t = jnp.pad(w_t, ((0, K_pad - K), (0, N_pad - N)))
        b_p = bias.reshape(1, N)
        if N_pad != N:
            b_p = jnp.pad(b_p, ((0, 0), (0, N_pad - N)))

        self.w = w_t                                              # (K_pad, N_pad) bf16
        self.b = b_p                                              # (1, N_pad) f32

    def __call__(self, x, *, allow_jnp_fallback=True):
        B = x.shape[0]
        x_flat = x.reshape(B, -1)                    # == torch .view(b, -1) (row-major)
        K = x_flat.shape[1]
        assert K == self.in_features, "input image size does not match the layer"
        N = self.num_classes

        tb, B_pad, tn, N_pad, tk, K_pad = _choose_tiles(B, K, N)
        assert self.w.shape == (K_pad, N_pad)

        # Degenerate problem sizes: fixed Pallas launch/pipeline overhead and
        # the N->128 lane padding dominate; a plain XLA dot is faster.
        if allow_jnp_fallback and B_pad * K_pad * N_pad < (1 << 21):
            out = jnp.dot(x_flat, self.w[:K, :N], preferred_element_type=jnp.float32)
            return out + self.b[:, :N]

        # Row/column padding of x.  No-op in the common case (B <= 512 ->
        # full-extent batch block; K a multiple of 128 or K <= 2048).
        if (B_pad, K_pad) != (B, K):
            x_p = jnp.pad(x_flat, ((0, B_pad - B), (0, K_pad - K)))
        else:
            x_p = x_flat

        grid = (B_pad // tb, N_pad // tn, K_pad // tk)

        # Double-buffered operands + resident f32 output; cap below v7x's
        # 64 MiB/TC physical VMEM (v5e/v6e have 128 MiB, so this is safe everywhere).
        vmem_bytes = 2 * (tb * tk * 4 + tk * tn * 2 + tb * tn * 4 + tn * 4)
        vmem_limit = int(min(max(vmem_bytes * 5 // 4 + (4 << 20), 32 << 20), 56 << 20))

        cost = pl.CostEstimate(
            flops=2 * B_pad * N_pad * K_pad,
            transcendentals=0,
            bytes_accessed=(B_pad * K_pad * 4 + K_pad * N_pad * 2
                            + N_pad * 4 + B_pad * N_pad * 4),
        )

        out = pl.pallas_call(
            _linear_kernel,
            out_shape=jax.ShapeDtypeStruct((B_pad, N_pad), jnp.float32),
            grid_spec=pltpu.PrefetchScalarGridSpec(
                num_scalar_prefetch=0,
                grid=grid,
                in_specs=[
                    pl.BlockSpec((tb, tk), lambda i, j, k: (i, k)),   # x    (f32)
                    pl.BlockSpec((tk, tn), lambda i, j, k: (k, j)),   # W^T  (bf16)
                    pl.BlockSpec((1, tn), lambda i, j, k: (0, j)),    # bias (f32)
                ],
                out_specs=pl.BlockSpec((tb, tn), lambda i, j, k: (i, j)),
            ),
            compiler_params=pltpu.CompilerParams(
                dimension_semantics=("parallel", "parallel", "arbitrary"),
                vmem_limit_bytes=vmem_limit,
            ),
            cost_estimate=cost,
        )(x_p, self.w, self.b)

        return out[:B, :N]


if __name__ == "__main__":
    # Small shapes consistent with the module: h = w = 16, num_classes = 6, batch = 2.
    B, C, H, W = 2, 3, 16, 16
    NUM_CLASSES = 6
    IN_FEATURES = C * H * W

    key = jax.random.PRNGKey(0)
    kx, kw, kb = jax.random.split(key, 3)

    x = jax.random.normal(kx, (B, C, H, W), dtype=jnp.float32)

    # Deterministic nn.Linear-style init: U(-1/sqrt(fan_in), 1/sqrt(fan_in)).
    bound = 1.0 / (IN_FEATURES ** 0.5)
    weight = jax.random.uniform(
        kw, (NUM_CLASSES, IN_FEATURES), minval=-bound, maxval=bound, dtype=jnp.float32)
    bias = jax.random.uniform(
        kb, (NUM_CLASSES,), minval=-bound, maxval=bound, dtype=jnp.float32)

    model = LinearClassifierPallas(weight, bias)   # one-time weight/bias prep
    # Disable the tiny-shape fallback so the Pallas kernel itself is exercised.
    logits = model(x, allow_jnp_fallback=False)
    logits = jax.block_until_ready(logits)
    assert logits.shape == (B, NUM_CLASSES)

    # Reference with the same bf16 operand rounding + f32 accumulation.
    xb = x.reshape(B, -1).astype(jnp.bfloat16).astype(jnp.float32)
    wb = weight.astype(jnp.bfloat16).astype(jnp.float32)
    ref = jnp.dot(xb, wb.T, precision=jax.lax.Precision.HIGHEST) + bias
    assert jnp.allclose(logits, ref, atol=1e-3, rtol=1e-3)

    # Looser check against the pure-f32 reference (bf16 rounding of operands).
    # TODO(synk): if bit-parity with the f32 PyTorch reference is required for
    # very large K, keep the weight in f32 at the cost of HBM/MXU throughput.
    ref_f32 = x.reshape(B, -1) @ weight.T + bias
    assert jnp.allclose(logits, ref_f32, atol=5e-2, rtol=5e-2)

    print("KERNEL_OK")
</pallas_src>

<mosaic_0001>
module attributes {stable_mosaic.version = 11 : i64} {
  func.func @_linear_kernel(%arg0: i32, %arg1: i32, %arg2: i32, %arg3: memref<2x768xf32, #tpu.memory_space<vmem>>, %arg4: memref<768x128xbf16, #tpu.memory_space<vmem>>, %arg5: memref<1x128xf32, #tpu.memory_space<vmem>>, %arg6: memref<2x128xf32, #tpu.memory_space<vmem>>) attributes {dimension_semantics = [#tpu.dimension_semantics<parallel>, #tpu.dimension_semantics<parallel>, #tpu.dimension_semantics<arbitrary>], iteration_bounds = array<i64: 1, 1, 1>, scalar_prefetch = 0 : i64, scratch_operands = 0 : i64, tpu.core_type = #tpu.core_type<tc>, window_params = [{transform_indices = @transform_0, window_bounds = array<i64: 2, 768>}, {transform_indices = @transform_1, window_bounds = array<i64: 768, 128>}, {transform_indices = @transform_2, window_bounds = array<i64: 1, 128>}, {transform_indices = @transform_3, window_bounds = array<i64: 2, 128>}]} {
    %c0_i32 = arith.constant 0 : i32
    %0 = arith.cmpi eq, %arg2, %c0_i32 : i32
    %1 = arith.extui %0 : i1 to i32
    %c0_i32_0 = arith.constant 0 : i32
    %2 = arith.cmpi ne, %1, %c0_i32_0 : i32
    scf.if %2 {
      %c0_8 = arith.constant 0 : index
      %c0_9 = arith.constant 0 : index
      %10 = vector.load %arg5[%c0_8, %c0_9] : memref<1x128xf32, #tpu.memory_space<vmem>>, vector<1x128xf32>
      %11 = vector.shape_cast %10 : vector<1x128xf32> to vector<1x128xf32>
      %12 = vector.broadcast %11 : vector<1x128xf32> to vector<2x128xf32>
      %c0_10 = arith.constant 0 : index
      %c0_11 = arith.constant 0 : index
      %13 = vector.load %arg6[%c0_10, %c0_11] : memref<2x128xf32, #tpu.memory_space<vmem>>, vector<2x128xf32>
      tpu.vector_store %arg6[%c0_10, %c0_11], %12 {strides = array<i32>} : memref<2x128xf32, #tpu.memory_space<vmem>>, vector<2x128xf32>,
    } else {
    }
    %c0 = arith.constant 0 : index
    %c0_1 = arith.constant 0 : index
    %3 = vector.load %arg6[%c0, %c0_1] : memref<2x128xf32, #tpu.memory_space<vmem>>, vector<2x128xf32>
    %c0_2 = arith.constant 0 : index
    %c0_3 = arith.constant 0 : index
    %4 = vector.load %arg3[%c0_2, %c0_3] : memref<2x768xf32, #tpu.memory_space<vmem>>, vector<2x768xf32>
    %5 = arith.truncf %4 : vector<2x768xf32> to vector<2x768xbf16>
    %c0_4 = arith.constant 0 : index
    %c0_5 = arith.constant 0 : index
    %6 = vector.load %arg4[%c0_4, %c0_5] : memref<768x128xbf16, #tpu.memory_space<vmem>>, vector<768x128xbf16>
    %cst = arith.constant dense<0.000000e+00> : vector<2x128xf32>
    %7 = tpu.matmul %5, %6, %cst {dimension_numbers = #tpu.dot_dimension_numbers<[1], [0], [0], [1], [0, 0, 1, 1], [], []>} : vector<2x768xbf16>, vector<768x128xbf16>, vector<2x128xf32> -> vector<2x128xf32>
    %8 = arith.addf %3, %7 : vector<2x128xf32>
    %c0_6 = arith.constant 0 : index
    %c0_7 = arith.constant 0 : index
    %9 = vector.load %arg6[%c0_6, %c0_7] : memref<2x128xf32, #tpu.memory_space<vmem>>, vector<2x128xf32>
    tpu.vector_store %arg6[%c0_6, %c0_7], %8 {strides = array<i32>} : memref<2x128xf32, #tpu.memory_space<vmem>>, vector<2x128xf32>,
    return
  }
  func.func @transform_0(%arg0: i32, %arg1: i32, %arg2: i32) -> (i32, i32) {
    %c0_i32 = arith.constant 0 : i32
    return %arg0, %arg2 : i32, i32
  }
  func.func @transform_1(%arg0: i32, %arg1: i32, %arg2: i32) -> (i32, i32) {
    %c0_i32 = arith.constant 0 : i32
    return %arg2, %arg1 : i32, i32
  }
  func.func @transform_2(%arg0: i32, %arg1: i32, %arg2: i32) -> (i32, i32) {
    %c0_i32 = arith.constant 0 : i32
    %c0_i32_0 = arith.constant 0 : i32
    return %c0_i32, %arg1 : i32, i32
  }
  func.func @transform_3(%arg0: i32, %arg1: i32, %arg2: i32) -> (i32, i32) {
    %c0_i32 = arith.constant 0 : i32
    return %arg0, %arg1 : i32, i32
  }
}

</mosaic_0001>

<bundles_post_ra>
// kernel: tpu_custom_call.1
= control target key start
LH: loop header
LB: loop body
LE: loop exit
PB: predicated region body
PF: predicated region fallthrough
CT: control target
= control target key end

     0   :  { %8 = vsyncpa [#allocation3], 0  ;;  %s893_s0 = inlined_call_operand.hbm [shape: f32[2,768], index: 0, kind: input, shape index: {}]   ;;  %s894_s1 = inlined_call_operand.hbm [shape: bf16[768,128], index: 1, kind: input, shape index: {}]   ;;  %s895_s2 = inlined_call_operand.vmem [shape: f32[1,128], index: 2, kind: input, shape index: {}]   ;;  %s896_s3 = inlined_call_operand.hbm [shape: f32[2,128], index: 3, kind: output, shape index: {}]  }
   0x1   :  { %9 = vsyncpa [#allocation6], 0 }
   0x2   :  { %10 = vsyncpa [#allocation4], 0  ;;  %s855_s12 = smov [#allocation2]   ;;  %s856_s14 = smov [#allocation5]  }
   0x3   :  { %s17_s13 = sshll.u32 %s855_s12, 4  ;;  %s26_s15 = sshll.u32 %s856_s14, 4  ;;  %s18_s13 = int_to_ptr.vmem [resolvable:$true] %s17_s13  ;;  %s27_s15 = int_to_ptr.vmem [resolvable:$true] %s26_s15 }
   0x4   :  { %s797_s16 = scalar_lea.vmem %s18_s13, 192  ;;  %p802_p1 = scmp.lt.s32.totalorder %s18_s13, %s18_s13 }
   0x5   :  { %p798_p0 = scmp.ne.s32.totalorder %s18_s13, %s797_s16  ;;  %p803_p2 = scmp.lt.s32.totalorder %s797_s16, %s797_s16 }
   0x7   :  { %p804_p3 = por %p803_p2, %p802_p1 }
   0x9   :  { %p805_p4 = pnand %p804_p3, %p798_p0 }
   0xb   :  { %808 = shalt.err (!%p805_p4)
}
   0xc   :  { %20 = dma.hbm_to_vmem [thread:$0]  %s893_s0, 192, %s18_s13, [#allocation3]  }
   0xd   :  { %s817_s19 = scalar_lea.vmem %s27_s15, 6144  ;;  %p822_p6 = scmp.lt.s32.totalorder %s27_s15, %s27_s15 }
   0xe   :  { %p818_p5 = scmp.ne.s32.totalorder %s27_s15, %s817_s19  ;;  %p823_p7 = scmp.lt.s32.totalorder %s817_s19, %s817_s19 }
  0x10   :  { %p824_p8 = por %p823_p7, %p822_p6 }
  0x12   :  { %p825_p9 = pnand %p824_p8, %p818_p5 }
  0x14   :  { %828 = shalt.err (!%p825_p9)
}
  0x15   :  { %s857_s20 = smov 64   ;;  %s858_s21 = smov 4  }
  0x16   :  { %32 = dma.hbm_to_vmem [thread:$0]  %s894_s1, 6144, %s27_s15, [#allocation6], %s857_s20, %s857_s20, %s858_s21  }
  0x17   :  { %849 = dma.done.wait [#allocation3], 192  }
  0x18   :  { %850 = vsyncadd [#allocation3], 4294967104 }
  0x19   :  { %851 = dma.done.wait [#allocation6], 6144  }
  0x1a   :  { %852 = vsyncadd [#allocation6], 4294961152  ;;  %v740_v0 = vld [vmem:[#allocation5 + $0x78] sm:$0xff]   ;;  %v744_v4 = vld [vmem:[#allocation5 + $0x70] sm:$0xff]   ;;  %v859_v22 = vmov 1983009808   ;;  %v63_v24 = vlaneseq }
  0x1b   :  { %v741_v1 = vld [vmem:[#allocation5 + $0xf8] sm:$0xff]   ;;  %668 = vmatprep.subr.bf16.mxu0 %v740_v0  ;;  %v745_v5 = vld [vmem:[#allocation5 + $0xf0] sm:$0xff]   ;;  %v748_v8 = vld [vmem:[#allocation5 + $0x68] sm:$0xff]   ;;  %v61_v23 = vunpack.c.l.s4 %v859_v22  ;;  %s860_s24 = smov [#allocation7]  }
  0x1c   :  { %v742_v2 = vld [vmem:[#allocation5 + $0x38] sm:$0xff]   ;;  %690 = vmatprep.subr.bf16.mxu1 %v741_v1  ;;  %v746_v6 = vld [vmem:[#allocation5 + $0x30] sm:$0xff]   ;;  %v749_v9 = vld [vmem:[#allocation5 + $0xe8] sm:$0xff]   ;;  %v64_v30 = vshrl.u32 %v63_v24, 7  ;;  %s608_s25 = sshll.u32 %s860_s24, 4  ;;  %s609_s25 = int_to_ptr.vmem [resolvable:$true] %s608_s25 }
  0x1d   :  { %v743_v3 = vld [vmem:[#allocation5 + $0xb8] sm:$0xff]   ;;  %669 = vmatpush3.bf16.msra.mxu0 %v742_v2  ;;  %v747_v7 = vld [vmem:[#allocation5 + $0xb0] sm:$0xff]   ;;  %v750_v10 = vld [vmem:[#allocation5 + $0x28] sm:$0xff]   ;;  %v62_v29 = vunpack.c.0.s8 %v61_v23  ;;  %p834_p11 = scmp.lt.s32.totalorder %s609_s25, %s609_s25 }
  0x1e   :  { %691 = vmatpush3.bf16.msra.mxu1 %v743_v3  ;;  %670 = vmatprep.subr.bf16.mxu0 %v744_v4  ;;  %v751_v11 = vld [vmem:[#allocation5 + $0xa8] sm:$0xff]   ;;  %v752_v12 = vld [vmem:[#allocation5 + $0x60] sm:$0xff]   ;;  %v756_v16 = vld [vmem:[#allocation5 + $0x58] sm:$0xff]  }
  0x1f   :  { %692 = vmatprep.subr.bf16.mxu1 %v745_v5  ;;  %v753_v13 = vld [vmem:[#allocation5 + $0xe0] sm:$0xff]   ;;  %v757_v17 = vld [vmem:[#allocation5 + $0xd8] sm:$0xff]   ;;  %v760_v20 = vld [vmem:[#allocation5 + $0x50] sm:$0xff]   ;;  %v65_v35 = vsub.s32 %v62_v29, %v64_v30 }
  0x20   :  { %v754_v14 = vld [vmem:[#allocation5 + $0x20] sm:$0xff]   ;;  %v758_v18 = vld [vmem:[#allocation5 + $0x18] sm:$0xff]   ;;  %v761_v21 = vld [vmem:[#allocation5 + $0xd0] sm:$0xff]  }
  0x21   :  { %671 = vmatpush3.bf16.msra.mxu0 %v746_v6  ;;  %v755_v15 = vld [vmem:[#allocation5 + $0xa0] sm:$0xff]   ;;  %v759_v19 = vld [vmem:[#allocation5 + $0x98] sm:$0xff]   ;;  %v762_v25 = vld [vmem:[#allocation5 + $0x10] sm:$0xff]  }
  0x22   :  { %693 = vmatpush3.bf16.msra.mxu1 %v747_v7  ;;  %672 = vmatprep.subr.bf16.mxu0 %v748_v8  ;;  %v763_v26 = vld [vmem:[#allocation5 + $0x90] sm:$0xff]   ;;  %v764_v27 = vld [vmem:[#allocation5 + $0x48] sm:$0xff]   ;;  %v768_v33 = vld [vmem:[#allocation5 + $0x40] sm:$0xff]  }
  0x23   :  { %694 = vmatprep.subr.bf16.mxu1 %v749_v9  ;;  %v765_v28 = vld [vmem:[#allocation5 + $0xc8] sm:$0xff]   ;;  %v769_v34 = vld [vmem:[#allocation5 + $0xc0] sm:$0xff]   ;;  %v55_v38 = vld [vmem:[#allocation2] sm:$0xff] }
  0x24   :  { %v766_v31 = vld [vmem:[#allocation5 + $0x8] sm:$0xff]   ;;  %v770_v36 = vld [vmem:[#allocation5] sm:$0xff]   ;;  %v66_v39 = vrot.slane %v55_v38, %v65_v35  ;;  %v59_v40 = vcombine.high %v55_v38, %v55_v38  ;;  %v773_v41 = vld [vmem:[#allocation5 + $0x178] sm:$0xff]  }
  0x25   :  { %673 = vmatpush3.bf16.msra.mxu0 %v750_v10  ;;  %v767_v32 = vld [vmem:[#allocation5 + $0x88] sm:$0xff]   ;;  %v771_v37 = vld [vmem:[#allocation5 + $0x80] sm:$0xff]   ;;  %v774_v47 = vld [vmem:[#allocation5 + $0x138] sm:$0xff]  }
  0x26   :  { %695 = vmatpush3.bf16.msra.mxu1 %v751_v11  ;;  %674 = vmatprep.subr.bf16.mxu0 %v752_v12  ;;  %v74_v42 = vcombine.high %v66_v39, %v66_v39  ;;  %v73_v43 = vrot.slane %v59_v40, %v65_v35  ;;  %v90_v44 = vpack.c.bf16 %v66_v39, %v66_v39  ;;  %v775_v49 = vld [vmem:[#allocation5 + $0x170] sm:$0xff]   ;;  %v777_v52 = vld [vmem:[#allocation5 + $0x168] sm:$0xff]   ;;  %v779_v54 = vld [vmem:[#allocation5 + $0x160] sm:$0xff]  }
  0x27   :  { %696 = vmatprep.subr.bf16.mxu1 %v753_v13  ;;  %v776_v51 = vld [vmem:[#allocation5 + $0x130] sm:$0xff]   ;;  %v778_v53 = vld [vmem:[#allocation5 + $0x128] sm:$0xff]   ;;  %v619_v55 = vld.sshfl [vmem:[#allocation2 + $0x8] sm:$0x33 pattern:$0x76325410] }
  0x28   :  { %v91_v45 = vpack.c.bf16 %v74_v42, %v74_v42  ;;  %v75_v46 = vcombine.high %v73_v43, %v73_v43  ;;  %v92_v48 = vpack.c.bf16 %v73_v43, %v73_v43  ;;  %v780_v56 = vld [vmem:[#allocation5 + $0x120] sm:$0xff]   ;;  %v83_v57 = vcombine.high %v619_v55, %v619_v55  ;;  %v781_v58 = vld [vmem:[#allocation5 + $0x158] sm:$0xff]   ;;  %v783_v61 = vld [vmem:[#allocation5 + $0x150] sm:$0xff]  }
  0x29   :  { %675 = vmatpush3.bf16.msra.mxu0 %v754_v14  ;;  %v782_v60 = vld [vmem:[#allocation5 + $0x118] sm:$0xff]   ;;  %v784_v62 = vld [vmem:[#allocation5 + $0x110] sm:$0xff]   ;;  %v785_v63 = vld [vmem:[#allocation5 + $0x148] sm:$0xff]   ;;  %v94_v3 = vpack.c.bf16 %v619_v55, %v619_v55 }
  0x2a   :  { %697 = vmatpush3.bf16.msra.mxu1 %v755_v15  ;;  %676 = vmatprep.subr.bf16.mxu0 %v756_v16  ;;  %v93_v50 = vpack.c.bf16 %v75_v46, %v75_v46  ;;  %v95_v59 = vpack.c.bf16 %v83_v57, %v83_v57  ;;  %v786_v0 = vld [vmem:[#allocation5 + $0x108] sm:$0xff]   ;;  %v787_v1 = vld [vmem:[#allocation5 + $0x140] sm:$0xff]   ;;  %v618_v4 = vld [vmem:[%s895_s2] ss:$0 sm:$0xff]  ;;  %s829_s2 = scalar_lea.vmem %s609_s25, 32 }
  0x2b   :  { %698 = vmatprep.subr.bf16.mxu1 %v757_v17  ;;  %512 = vmatprep.mubr.bf16.mxu0 %v91_v45  ;;  %v788_v2 = vld [vmem:[#allocation5 + $0x100] sm:$0xff]   ;;  %53 = vst [vmem:[#allocation7] sm:$0x3] %v618_v4  ;;  %p830_p10 = scmp.ne.s32.totalorder %s609_s25, %s829_s2  ;;  %p835_p12 = scmp.lt.s32.totalorder %s829_s2, %s829_s2 }
  0x2c   :  { %552 = vmatprep.mubr.bf16.mxu1 %v93_v50 }
  0x2d   :  { %677 = vmatpush3.bf16.msra.mxu0 %v758_v18  ;;  %p836_p13 = por %p835_p12, %p834_p11 }
  0x2e   :  { %699 = vmatpush3.bf16.msra.mxu1 %v759_v19  ;;  %678 = vmatprep.subr.bf16.mxu0 %v760_v20 }
  0x2f   :  { %700 = vmatprep.subr.bf16.mxu1 %v761_v21  ;;  %p837_p0 = pnand %p836_p13, %p830_p10 }
  0x31   :  { %679 = vmatpush3.bf16.msra.mxu0 %v762_v25 }
  0x32   :  { %701 = vmatpush3.bf16.msra.mxu1 %v763_v26  ;;  %680 = vmatprep.subr.bf16.mxu0 %v764_v27  ;;  %v54_v19 = vld [vmem:[#allocation7] sm:$0x3] }
  0x33   :  { %702 = vmatprep.subr.bf16.mxu1 %v765_v28 }
  0x35   :  { %681 = vmatpush3.bf16.msra.mxu0 %v766_v31 }
  0x36   :  { %703 = vmatpush3.bf16.msra.mxu1 %v767_v32  ;;  %682 = vmatprep.subr.bf16.mxu0 %v768_v33 }
  0x37   :  { %704 = vmatprep.subr.bf16.mxu1 %v769_v34 }
  0x39   :  { %683 = vmatpush3.bf16.msra.mxu0 %v770_v36 }
  0x3a   :  { %705 = vmatpush3.bf16.msra.mxu1 %v771_v37  ;;  %712 = vmatprep.subr.bf16.mxu0 %v773_v41 }
  0x3c   :  { %513 = vmatmul.mubr.bf16.vlgmr.msra.gmra.mxu0 %v90_v44 }
  0x3d   :  { %713 = vmatpush3.bf16.msra.mxu0 %v774_v47  ;;  %553 = vmatmul.mubr.bf16.vlgmr.msra.gmra.mxu1 %v92_v48 }
  0x3e   :  { %714 = vmatprep.subr.bf16.mxu0 %v775_v49  ;;  %592 = vmatprep.mubr.bf16.mxu0 %v95_v59 }
  0x41   :  { %715 = vmatpush3.bf16.msra.mxu0 %v776_v51 }
  0x42   :  { %716 = vmatprep.subr.bf16.mxu0 %v777_v52 }
  0x45   :  { %717 = vmatpush3.bf16.msra.mxu0 %v778_v53 }
  0x46   :  { %718 = vmatprep.subr.bf16.mxu0 %v779_v54 }
  0x49   :  { %719 = vmatpush3.bf16.msra.mxu0 %v780_v56 }
  0x4a   :  { %720 = vmatprep.subr.bf16.mxu0 %v781_v58 }
  0x4d   :  { %721 = vmatpush3.bf16.msra.mxu0 %v782_v60 }
  0x4e   :  { %722 = vmatprep.subr.bf16.mxu0 %v783_v61 }
  0x51   :  { %723 = vmatpush3.bf16.msra.mxu0 %v784_v62 }
  0x52   :  { %724 = vmatprep.subr.bf16.mxu0 %v785_v63 }
  0x55   :  { %725 = vmatpush3.bf16.msra.mxu0 %v786_v0 }
  0x56   :  { %726 = vmatprep.subr.bf16.mxu0 %v787_v1 }
  0x59   :  { %727 = vmatpush3.bf16.msra.mxu0 %v788_v2 }
  0x5c   :  { %593 = vmatmul.mubr.bf16.vlgmr.msra.gmra.mxu0 %v94_v3 }
  0xfc   :  { %v684_v5 = vpop.f32.mrf.mxu0 }
  0xfd   :  { %v706_v6 = vpop.f32.mrf.mxu1 }
  0xfe   :  { %v685_v7 = vpop.f32.mrf.mxu0 }
  0xff   :  { %v707_v8 = vpop.f32.mrf.mxu1  ;;  %v686_v13 = vadd.f32 %v685_v7, %v684_v5 }
 0x100   :  { %v687_v9 = vpop.f32.mrf.mxu0  ;;  %v708_v14 = vadd.f32 %v707_v8, %v706_v6 }
 0x101   :  { %v709_v11 = vpop.f32.mrf.mxu1 }
 0x102   :  { %v688_v10 = vpop.f32.mrf.mxu0  ;;  %v555_v17 = vadd.f32 %v708_v14, %v686_v13 }
 0x103   :  { %v710_v12 = vpop.f32.mrf.mxu1 }
 0x11c   :  { %v728_v15 = vpop.f32.mrf.mxu0 }
 0x11e   :  { %v729_v16 = vpop.f32.mrf.mxu0 }
 0x11f   :  { %v730_v18 = vadd.f32 %v729_v16, %v728_v15 }
 0x120   :  { %v731_v20 = vpop.f32.mrf.mxu0 }
 0x121   :  { %v595_v21 = vadd.f32 %v730_v18, %v555_v17 }
 0x122   :  { %v732_v22 = vpop.f32.mrf.mxu0 }
 0x123   :  { %v600_v23 = vadd.f32 %v595_v21, %v54_v19 }
 0x125   :  { %601 = vst [vmem:[#allocation7] sm:$0x3] %v600_v23 }
 0x126   :  { %840 = shalt.err (!%p837_p0)
}
 0x127   :  { %611 = dma.vmem_to_hbm [thread:$0]  %s609_s25, 32, %s896_s3, [#allocation4]  }
 0x128   :  { %853 = dma.done.wait [#allocation4], 32  }
 0x129   :  { %854 = vsyncadd [#allocation4], 4294967264 }
 0x12a   :  { %615 = vsyncpa [#allocation3], 1 }
 0x12b   :  { %616 = vsyncpa [#allocation6], 1 }
 0x12c   :  { %617 = vsyncpa [#allocation4], 1 }

</bundles_post_ra>
